<compile_context>
chip_gen: v7x
topology: tpu7x:2x2x1
jax: 0.10.0
libtpu: 0.0.40
codegen_flags: <defaults>
</compile_context>

<pallas_src>
import functools

import jax
import jax.numpy as jnp
from jax.experimental import pallas as pl
from jax.experimental.pallas import tpu as pltpu


def _rand_quant_kernel(x_ref, p_ref, o_ref, *, region_num):
    """Per-channel randomized quantization.

    x_ref: (block_c, HW)      channel rows of the flattened image
    p_ref: (block_c, 2R-1)    cols [0, R-1): sorted region percentiles
                              cols [R-1, 2R-1): in-region random percentiles
    o_ref: (block_c, HW)      quantized output
    """
    R = region_num
    xv = x_ref[...].astype(jnp.float32)                  # (block_c, HW)

    # Per-row min / max.  The lane block equals the full HW extent, so the
    # logical ref has no lane padding -> the XLU reductions need no masking.
    min_v = jnp.min(xv, axis=-1, keepdims=True)          # (block_c, 1)
    max_v = jnp.max(xv, axis=-1, keepdims=True)          # (block_c, 1)
    rng = max_v - min_v                                  # >= 0

    params = p_ref[...].astype(jnp.float32)              # (block_c, 2R-1)

    # Per-row, per-region scalars: tiny (block_c, 1) math hoisted out of the
    # full-width element work.  Percentiles arrive pre-sorted, so the region
    # boundaries are already ordered (rng >= 0).
    lefts = []
    randvs = []
    for r in range(R):
        left = min_v if r == 0 else min_v + params[:, r - 1:r] * rng
        if r == R - 1:
            # 1e-6 matches the torch module; it is an *absolute* epsilon and is
            # swallowed in f32 for very large-magnitude inputs (same as torch).
            right = max_v + 1e-6
        else:
            right = min_v + params[:, r:r + 1] * rng
        proxy = params[:, (R - 1) + r:(R - 1) + r + 1]
        randvs.append(left + proxy * (right - left))     # 'inside_random' collapse value
        lefts.append(left)

    # Regions are contiguous, sorted, half-open intervals, so membership is a
    # monotone prefix over the left boundaries:
    #   out = randv_0 + sum_{r>=1} [x >= left_r] * (randv_r - randv_{r-1})
    # One compare + select + add per boundary instead of the original
    # 2 compares + and + argmax + gather per region.  This exactly reproduces
    # torch's half-open-interval / argmax-of-first-true semantics, including
    # the (measure-zero) tied-boundary and rng==0 cases.
    out = jnp.broadcast_to(randvs[0], xv.shape)
    for r in range(1, R):
        delta = randvs[r] - randvs[r - 1]                # (block_c, 1)
        out = out + jnp.where(xv >= lefts[r], delta, jnp.float32(0.0))

    # NOTE: for non-float x dtypes this truncates, same as torch's .type(x.dtype).
    o_ref[...] = out.astype(o_ref.dtype)


def _choose_block_c(C, HW, itemsize, target_bytes=4 << 20, max_rows=512):
    """Largest row-block (multiple of 8) whose tile is ~target_bytes.

    Double-buffered in + out tiles (~4 * target_bytes) stay well inside the
    scoped-VMEM limit requested below on all of v5e / v6e / v7x.
    """
    rows = max(8, target_bytes // max(1, HW * itemsize))
    rows = min(int(rows), max_rows)
    rows = max(8, (rows // 8) * 8)
    rows_cap = ((C + 7) // 8) * 8            # never exceed (rounded-up) C
    return min(rows, rows_cap)


def randomized_quantization(x, key, region_num=8, block_c=None):
    """x: (B, c, H, W). Returns (quantized x, (sorted_percentiles, proxy_percentiles))."""
    B, c, H, W = x.shape
    C, HW = B * c, H * W
    R = region_num
    x2 = x.reshape(C, HW)

    # torch.rand equivalents (spacing='random' / collapse_to_val='inside_random').
    k1, k2 = jax.random.split(key)
    region_perc = jax.random.uniform(k1, (C, R - 1), dtype=jnp.float32)
    # TODO(synk): the tiny (C, R-1) boundary sort has no Mosaic lowering; it is
    # host/XLA-side glue (sorting percentiles == sorting positions since rng >= 0).
    region_perc = jnp.sort(region_perc, axis=1)
    proxy_perc = jax.random.uniform(k2, (C, R), dtype=jnp.float32)
    # Single merged params input: halves the number of tiny per-step DMAs.
    params = jnp.concatenate([region_perc, proxy_perc], axis=1)       # (C, 2R-1)

    if block_c is None:
        block_c = _choose_block_c(C, HW, jnp.dtype(x.dtype).itemsize)

    kernel = functools.partial(_rand_quant_kernel, region_num=R)
    out2 = pl.pallas_call(
        kernel,
        out_shape=jax.ShapeDtypeStruct((C, HW), x.dtype),
        grid_spec=pltpu.PrefetchScalarGridSpec(
            num_scalar_prefetch=0,
            grid=(pl.cdiv(C, block_c),),
            in_specs=[
                # Lane dim == full HW extent -> no host-side pad; Pallas clips
                # the (possibly partial) last C block at writeback, and garbage
                # in padded rows never escapes (per-row independent math).
                pl.BlockSpec((block_c, HW), lambda i: (i, 0)),
                pl.BlockSpec((block_c, 2 * R - 1), lambda i: (i, 0)),
            ],
            out_specs=pl.BlockSpec((block_c, HW), lambda i: (i, 0)),
        ),
        compiler_params=pltpu.CompilerParams(
            # Per-channel work is independent across the grid axis -> shards
            # across both TensorCores on v7x; measured-neutral on v5e/v6e.
            dimension_semantics=("parallel",),
            # Headroom above v5e's 16 MiB scoped default; well under v7x's
            # 64 MiB physical VMEM (double-buffered ~4 MiB in + out tiles).
            vmem_limit_bytes=32 * 1024 * 1024,
        ),
    )(x2, params)

    return out2.reshape(B, c, H, W), (region_perc, proxy_perc)


def _reference(x, region_perc_sorted, proxy_perc):
    """Pure-JAX re-implementation of the torch forward (same randoms)."""
    B, c, H, W = x.shape
    C = B * c
    xf = x.reshape(C, H * W).astype(jnp.float32)
    min_v = xf.min(axis=1, keepdims=True)
    max_v = xf.max(axis=1, keepdims=True)
    pos = min_v + region_perc_sorted * (max_v - min_v)                 # (C, R-1)
    right = jnp.concatenate([pos, max_v + 1e-6], axis=1)               # (C, R)
    right_check = jnp.concatenate([pos, max_v + 1.0], axis=1)          # (C, R)
    left = jnp.concatenate([min_v, pos], axis=1)                       # (C, R)
    rand_val = left + proxy_perc * (right - left)                      # (C, R)
    inside = (xf[:, None, :] < right_check[:, :, None]) & (xf[:, None, :] >= left[:, :, None])
    rid = jnp.argmax(inside.astype(jnp.int32), axis=1)                 # (C, HW)
    out = jnp.take_along_axis(rand_val, rid, axis=1)
    return out.astype(x.dtype).reshape(B, c, H, W)


if __name__ == "__main__":
    key = jax.random.PRNGKey(0)
    kx, kr = jax.random.split(key)
    x = jax.random.normal(kx, (2, 4, 16, 16), dtype=jnp.float32)

    y, (region_perc, proxy_perc) = randomized_quantization(x, kr, region_num=8)
    y = jax.block_until_ready(y)

    y_ref = _reference(x, region_perc, proxy_perc)
    assert y.shape == x.shape and y.dtype == x.dtype
    assert jnp.allclose(y, y_ref, atol=1e-5, rtol=1e-5), "mismatch vs reference"
    print("KERNEL_OK")
</pallas_src>

<mosaic_0001>
module attributes {stable_mosaic.version = 11 : i64} {
  func.func @_rand_quant_kernel(%arg0: i32, %arg1: memref<8x256xf32, #tpu.memory_space<vmem>>, %arg2: memref<8x15xf32, #tpu.memory_space<vmem>>, %arg3: memref<8x256xf32, #tpu.memory_space<vmem>>) attributes {dimension_semantics = [#tpu.dimension_semantics<parallel>], iteration_bounds = array<i64: 1>, scalar_prefetch = 0 : i64, scratch_operands = 0 : i64, tpu.core_type = #tpu.core_type<tc>, window_params = [{transform_indices = @transform_0, window_bounds = array<i64: 8, 256>}, {transform_indices = @transform_1, window_bounds = array<i64: 8, 15>}, {transform_indices = @transform_2, window_bounds = array<i64: 8, 256>}]} {
    %c0 = arith.constant 0 : index
    %c0_0 = arith.constant 0 : index
    %0 = vector.load %arg1[%c0, %c0_0] : memref<8x256xf32, #tpu.memory_space<vmem>>, vector<8x256xf32>
    %cst = arith.constant dense<0x7F800000> : vector<8xf32>
    %1 = vector.multi_reduction <minimumf>, %0, %cst [1] : vector<8x256xf32> to vector<8xf32>
    %2 = vector.shape_cast %1 : vector<8xf32> to vector<8x1xf32>
    %cst_1 = arith.constant dense<0xFF800000> : vector<8xf32>
    %3 = vector.multi_reduction <maximumf>, %0, %cst_1 [1] : vector<8x256xf32> to vector<8xf32>
    %4 = vector.shape_cast %3 : vector<8xf32> to vector<8x1xf32>
    %5 = arith.subf %4, %2 : vector<8x1xf32>
    %c0_2 = arith.constant 0 : index
    %c0_3 = arith.constant 0 : index
    %6 = vector.load %arg2[%c0_2, %c0_3] : memref<8x15xf32, #tpu.memory_space<vmem>>, vector<8x15xf32>
    %7 = vector.extract_strided_slice %6 {offsets = [0, 0], sizes = [8, 1], strides = [1, 1]} : vector<8x15xf32> to vector<8x1xf32>
    %8 = arith.mulf %7, %5 : vector<8x1xf32>
    %9 = arith.addf %2, %8 : vector<8x1xf32>
    %10 = vector.extract_strided_slice %6 {offsets = [0, 7], sizes = [8, 1], strides = [1, 1]} : vector<8x15xf32> to vector<8x1xf32>
    %11 = arith.subf %9, %2 : vector<8x1xf32>
    %12 = arith.mulf %10, %11 : vector<8x1xf32>
    %13 = arith.addf %2, %12 : vector<8x1xf32>
    %14 = vector.extract_strided_slice %6 {offsets = [0, 0], sizes = [8, 1], strides = [1, 1]} : vector<8x15xf32> to vector<8x1xf32>
    %15 = arith.mulf %14, %5 : vector<8x1xf32>
    %16 = arith.addf %2, %15 : vector<8x1xf32>
    %17 = vector.extract_strided_slice %6 {offsets = [0, 1], sizes = [8, 1], strides = [1, 1]} : vector<8x15xf32> to vector<8x1xf32>
    %18 = arith.mulf %17, %5 : vector<8x1xf32>
    %19 = arith.addf %2, %18 : vector<8x1xf32>
    %20 = vector.extract_strided_slice %6 {offsets = [0, 8], sizes = [8, 1], strides = [1, 1]} : vector<8x15xf32> to vector<8x1xf32>
    %21 = arith.subf %19, %16 : vector<8x1xf32>
    %22 = arith.mulf %20, %21 : vector<8x1xf32>
    %23 = arith.addf %16, %22 : vector<8x1xf32>
    %24 = vector.extract_strided_slice %6 {offsets = [0, 1], sizes = [8, 1], strides = [1, 1]} : vector<8x15xf32> to vector<8x1xf32>
    %25 = arith.mulf %24, %5 : vector<8x1xf32>
    %26 = arith.addf %2, %25 : vector<8x1xf32>
    %27 = vector.extract_strided_slice %6 {offsets = [0, 2], sizes = [8, 1], strides = [1, 1]} : vector<8x15xf32> to vector<8x1xf32>
    %28 = arith.mulf %27, %5 : vector<8x1xf32>
    %29 = arith.addf %2, %28 : vector<8x1xf32>
    %30 = vector.extract_strided_slice %6 {offsets = [0, 9], sizes = [8, 1], strides = [1, 1]} : vector<8x15xf32> to vector<8x1xf32>
    %31 = arith.subf %29, %26 : vector<8x1xf32>
    %32 = arith.mulf %30, %31 : vector<8x1xf32>
    %33 = arith.addf %26, %32 : vector<8x1xf32>
    %34 = vector.extract_strided_slice %6 {offsets = [0, 2], sizes = [8, 1], strides = [1, 1]} : vector<8x15xf32> to vector<8x1xf32>
    %35 = arith.mulf %34, %5 : vector<8x1xf32>
    %36 = arith.addf %2, %35 : vector<8x1xf32>
    %37 = vector.extract_strided_slice %6 {offsets = [0, 3], sizes = [8, 1], strides = [1, 1]} : vector<8x15xf32> to vector<8x1xf32>
    %38 = arith.mulf %37, %5 : vector<8x1xf32>
    %39 = arith.addf %2, %38 : vector<8x1xf32>
    %40 = vector.extract_strided_slice %6 {offsets = [0, 10], sizes = [8, 1], strides = [1, 1]} : vector<8x15xf32> to vector<8x1xf32>
    %41 = arith.subf %39, %36 : vector<8x1xf32>
    %42 = arith.mulf %40, %41 : vector<8x1xf32>
    %43 = arith.addf %36, %42 : vector<8x1xf32>
    %44 = vector.extract_strided_slice %6 {offsets = [0, 3], sizes = [8, 1], strides = [1, 1]} : vector<8x15xf32> to vector<8x1xf32>
    %45 = arith.mulf %44, %5 : vector<8x1xf32>
    %46 = arith.addf %2, %45 : vector<8x1xf32>
    %47 = vector.extract_strided_slice %6 {offsets = [0, 4], sizes = [8, 1], strides = [1, 1]} : vector<8x15xf32> to vector<8x1xf32>
    %48 = arith.mulf %47, %5 : vector<8x1xf32>
    %49 = arith.addf %2, %48 : vector<8x1xf32>
    %50 = vector.extract_strided_slice %6 {offsets = [0, 11], sizes = [8, 1], strides = [1, 1]} : vector<8x15xf32> to vector<8x1xf32>
    %51 = arith.subf %49, %46 : vector<8x1xf32>
    %52 = arith.mulf %50, %51 : vector<8x1xf32>
    %53 = arith.addf %46, %52 : vector<8x1xf32>
    %54 = vector.extract_strided_slice %6 {offsets = [0, 4], sizes = [8, 1], strides = [1, 1]} : vector<8x15xf32> to vector<8x1xf32>
    %55 = arith.mulf %54, %5 : vector<8x1xf32>
    %56 = arith.addf %2, %55 : vector<8x1xf32>
    %57 = vector.extract_strided_slice %6 {offsets = [0, 5], sizes = [8, 1], strides = [1, 1]} : vector<8x15xf32> to vector<8x1xf32>
    %58 = arith.mulf %57, %5 : vector<8x1xf32>
    %59 = arith.addf %2, %58 : vector<8x1xf32>
    %60 = vector.extract_strided_slice %6 {offsets = [0, 12], sizes = [8, 1], strides = [1, 1]} : vector<8x15xf32> to vector<8x1xf32>
    %61 = arith.subf %59, %56 : vector<8x1xf32>
    %62 = arith.mulf %60, %61 : vector<8x1xf32>
    %63 = arith.addf %56, %62 : vector<8x1xf32>
    %64 = vector.extract_strided_slice %6 {offsets = [0, 5], sizes = [8, 1], strides = [1, 1]} : vector<8x15xf32> to vector<8x1xf32>
    %65 = arith.mulf %64, %5 : vector<8x1xf32>
    %66 = arith.addf %2, %65 : vector<8x1xf32>
    %67 = vector.extract_strided_slice %6 {offsets = [0, 6], sizes = [8, 1], strides = [1, 1]} : vector<8x15xf32> to vector<8x1xf32>
    %68 = arith.mulf %67, %5 : vector<8x1xf32>
    %69 = arith.addf %2, %68 : vector<8x1xf32>
    %70 = vector.extract_strided_slice %6 {offsets = [0, 13], sizes = [8, 1], strides = [1, 1]} : vector<8x15xf32> to vector<8x1xf32>
    %71 = arith.subf %69, %66 : vector<8x1xf32>
    %72 = arith.mulf %70, %71 : vector<8x1xf32>
    %73 = arith.addf %66, %72 : vector<8x1xf32>
    %74 = vector.extract_strided_slice %6 {offsets = [0, 6], sizes = [8, 1], strides = [1, 1]} : vector<8x15xf32> to vector<8x1xf32>
    %75 = arith.mulf %74, %5 : vector<8x1xf32>
    %76 = arith.addf %2, %75 : vector<8x1xf32>
    %cst_4 = arith.constant 9.99999997E-7 : f32
    %77 = vector.broadcast %cst_4 : f32 to vector<8x1xf32>
    %78 = arith.addf %4, %77 : vector<8x1xf32>
    %79 = vector.extract_strided_slice %6 {offsets = [0, 14], sizes = [8, 1], strides = [1, 1]} : vector<8x15xf32> to vector<8x1xf32>
    %80 = arith.subf %78, %76 : vector<8x1xf32>
    %81 = arith.mulf %79, %80 : vector<8x1xf32>
    %82 = arith.addf %76, %81 : vector<8x1xf32>
    %83 = vector.shape_cast %13 : vector<8x1xf32> to vector<8x1xf32>
    %84 = vector.broadcast %83 : vector<8x1xf32> to vector<8x256xf32>
    %85 = arith.subf %23, %13 : vector<8x1xf32>
    %86 = vector.broadcast %16 : vector<8x1xf32> to vector<8x256xf32>
    %87 = arith.cmpf oge, %0, %86 : vector<8x256xf32>
    %cst_5 = arith.constant 0.000000e+00 : f32
    %88 = vector.shape_cast %85 : vector<8x1xf32> to vector<8x1xf32>
    %89 = vector.broadcast %88 : vector<8x1xf32> to vector<8x256xf32>
    %90 = vector.broadcast %cst_5 : f32 to vector<8x256xf32>
    %91 = arith.select %87, %89, %90 : vector<8x256xi1>, vector<8x256xf32>
    %92 = arith.addf %84, %91 : vector<8x256xf32>
    %93 = arith.subf %33, %23 : vector<8x1xf32>
    %94 = vector.broadcast %26 : vector<8x1xf32> to vector<8x256xf32>
    %95 = arith.cmpf oge, %0, %94 : vector<8x256xf32>
    %cst_6 = arith.constant 0.000000e+00 : f32
    %96 = vector.shape_cast %93 : vector<8x1xf32> to vector<8x1xf32>
    %97 = vector.broadcast %96 : vector<8x1xf32> to vector<8x256xf32>
    %98 = vector.broadcast %cst_6 : f32 to vector<8x256xf32>
    %99 = arith.select %95, %97, %98 : vector<8x256xi1>, vector<8x256xf32>
    %100 = arith.addf %92, %99 : vector<8x256xf32>
    %101 = arith.subf %43, %33 : vector<8x1xf32>
    %102 = vector.broadcast %36 : vector<8x1xf32> to vector<8x256xf32>
    %103 = arith.cmpf oge, %0, %102 : vector<8x256xf32>
    %cst_7 = arith.constant 0.000000e+00 : f32
    %104 = vector.shape_cast %101 : vector<8x1xf32> to vector<8x1xf32>
    %105 = vector.broadcast %104 : vector<8x1xf32> to vector<8x256xf32>
    %106 = vector.broadcast %cst_7 : f32 to vector<8x256xf32>
    %107 = arith.select %103, %105, %106 : vector<8x256xi1>, vector<8x256xf32>
    %108 = arith.addf %100, %107 : vector<8x256xf32>
    %109 = arith.subf %53, %43 : vector<8x1xf32>
    %110 = vector.broadcast %46 : vector<8x1xf32> to vector<8x256xf32>
    %111 = arith.cmpf oge, %0, %110 : vector<8x256xf32>
    %cst_8 = arith.constant 0.000000e+00 : f32
    %112 = vector.shape_cast %109 : vector<8x1xf32> to vector<8x1xf32>
    %113 = vector.broadcast %112 : vector<8x1xf32> to vector<8x256xf32>
    %114 = vector.broadcast %cst_8 : f32 to vector<8x256xf32>
    %115 = arith.select %111, %113, %114 : vector<8x256xi1>, vector<8x256xf32>
    %116 = arith.addf %108, %115 : vector<8x256xf32>
    %117 = arith.subf %63, %53 : vector<8x1xf32>
    %118 = vector.broadcast %56 : vector<8x1xf32> to vector<8x256xf32>
    %119 = arith.cmpf oge, %0, %118 : vector<8x256xf32>
    %cst_9 = arith.constant 0.000000e+00 : f32
    %120 = vector.shape_cast %117 : vector<8x1xf32> to vector<8x1xf32>
    %121 = vector.broadcast %120 : vector<8x1xf32> to vector<8x256xf32>
    %122 = vector.broadcast %cst_9 : f32 to vector<8x256xf32>
    %123 = arith.select %119, %121, %122 : vector<8x256xi1>, vector<8x256xf32>
    %124 = arith.addf %116, %123 : vector<8x256xf32>
    %125 = arith.subf %73, %63 : vector<8x1xf32>
    %126 = vector.broadcast %66 : vector<8x1xf32> to vector<8x256xf32>
    %127 = arith.cmpf oge, %0, %126 : vector<8x256xf32>
    %cst_10 = arith.constant 0.000000e+00 : f32
    %128 = vector.shape_cast %125 : vector<8x1xf32> to vector<8x1xf32>
    %129 = vector.broadcast %128 : vector<8x1xf32> to vector<8x256xf32>
    %130 = vector.broadcast %cst_10 : f32 to vector<8x256xf32>
    %131 = arith.select %127, %129, %130 : vector<8x256xi1>, vector<8x256xf32>
    %132 = arith.addf %124, %131 : vector<8x256xf32>
    %133 = arith.subf %82, %73 : vector<8x1xf32>
    %134 = vector.broadcast %76 : vector<8x1xf32> to vector<8x256xf32>
    %135 = arith.cmpf oge, %0, %134 : vector<8x256xf32>
    %cst_11 = arith.constant 0.000000e+00 : f32
    %136 = vector.shape_cast %133 : vector<8x1xf32> to vector<8x1xf32>
    %137 = vector.broadcast %136 : vector<8x1xf32> to vector<8x256xf32>
    %138 = vector.broadcast %cst_11 : f32 to vector<8x256xf32>
    %139 = arith.select %135, %137, %138 : vector<8x256xi1>, vector<8x256xf32>
    %140 = arith.addf %132, %139 : vector<8x256xf32>
    %c0_12 = arith.constant 0 : index
    %c0_13 = arith.constant 0 : index
    %141 = vector.load %arg3[%c0_12, %c0_13] : memref<8x256xf32, #tpu.memory_space<vmem>>, vector<8x256xf32>
    tpu.vector_store %arg3[%c0_12, %c0_13], %140 {strides = array<i32>} : memref<8x256xf32, #tpu.memory_space<vmem>>, vector<8x256xf32>,
    return
  }
  func.func @transform_0(%arg0: i32) -> (i32, i32) {
    %c0_i32 = arith.constant 0 : i32
    %c0_i32_0 = arith.constant 0 : i32
    return %arg0, %c0_i32 : i32, i32
  }
  func.func @transform_1(%arg0: i32) -> (i32, i32) {
    %c0_i32 = arith.constant 0 : i32
    %c0_i32_0 = arith.constant 0 : i32
    return %arg0, %c0_i32 : i32, i32
  }
  func.func @transform_2(%arg0: i32) -> (i32, i32) {
    %c0_i32 = arith.constant 0 : i32
    %c0_i32_0 = arith.constant 0 : i32
    return %arg0, %c0_i32 : i32, i32
  }
}

</mosaic_0001>

<bundles_post_ra>
// kernel: tpu_custom_call.1
= control target key start
LH: loop header
LB: loop body
LE: loop exit
PB: predicated region body
PF: predicated region fallthrough
CT: control target
= control target key end

     0   :  { %7 = vsyncpa [#allocation3], 0  ;;  %s425_s0 = inlined_call_operand.hbm [shape: f32[8,256], index: 0, kind: input, shape index: {}]   ;;  %s426_s1 = inlined_call_operand.hbm [shape: f32[8,15], index: 1, kind: input, shape index: {}]   ;;  %s427_s2 = inlined_call_operand.hbm [shape: f32[8,256], index: 2, kind: output, shape index: {}]  }
   0x1   :  { %8 = vsyncpa [#allocation6], 0 }
   0x2   :  { %9 = vsyncpa [#allocation4], 0  ;;  %s319_s9 = smov [#allocation2]   ;;  %s320_s11 = smov [#allocation5]  }
   0x3   :  { %s16_s10 = sshll.u32 %s319_s9, 4  ;;  %s26_s12 = sshll.u32 %s320_s11, 4  ;;  %s17_s10 = int_to_ptr.vmem [resolvable:$true] %s16_s10  ;;  %s27_s12 = int_to_ptr.vmem [resolvable:$true] %s26_s12 }
   0x4   :  { %s247_s15 = scalar_lea.hbm %s425_s0, 256 }
   0x5   :  { %p248_p0 = scmp.ne.s32.totalorder %s425_s0, %s247_s15  ;;  %p251_p1 = scmp.lt.u32.totalorder %s247_s15, %s425_s0 }
   0x7   :  { %p253_p2 = pnand %p251_p1, %p248_p0 }
   0x9   :  { %256 = shalt.err (!%p253_p2)
}
   0xa   :  { %s257_s20 = scalar_lea.vmem %s17_s10, 256  ;;  %p262_p4 = scmp.lt.s32.totalorder %s17_s10, %s17_s10 }
   0xb   :  { %p258_p3 = scmp.ne.s32.totalorder %s17_s10, %s257_s20  ;;  %p263_p5 = scmp.lt.s32.totalorder %s257_s20, %s257_s20 }
   0xd   :  { %p264_p6 = por %p263_p5, %p262_p4 }
   0xf   :  { %p265_p7 = pnand %p264_p6, %p258_p3 }
  0x11   :  { %268 = shalt.err (!%p265_p7)
}
  0x12   :  { %19 = dma.hbm_to_vmem [thread:$0]  %s425_s0, 256, %s17_s10, [#allocation3]  }
  0x13   :  { %s269_s25 = scalar_lea.hbm %s426_s1, 128 }
  0x14   :  { %p270_p8 = scmp.ne.s32.totalorder %s426_s1, %s269_s25  ;;  %p273_p9 = scmp.lt.u32.totalorder %s269_s25, %s426_s1 }
  0x16   :  { %p275_p10 = pnand %p273_p9, %p270_p8 }
  0x18   :  { %278 = shalt.err (!%p275_p10)
}
  0x19   :  { %s279_s30 = scalar_lea.vmem %s27_s12, 128  ;;  %p284_p12 = scmp.lt.s32.totalorder %s27_s12, %s27_s12 }
  0x1a   :  { %p280_p11 = scmp.ne.s32.totalorder %s27_s12, %s279_s30  ;;  %p285_p13 = scmp.lt.s32.totalorder %s279_s30, %s279_s30 }
  0x1c   :  { %p286_p0 = por %p285_p13, %p284_p12 }
  0x1e   :  { %p287_p1 = pnand %p286_p0, %p280_p11 }
  0x20   :  { %290 = shalt.err (!%p287_p1)
}
  0x21   :  { %29 = dma.hbm_to_vmem [thread:$0]  %s426_s1, 128, %s27_s12, [#allocation6]  }
  0x22   :  { %313 = dma.done.wait [#allocation3], 256  }
  0x23   :  { %314 = vsyncadd [#allocation3], 4294967040 }
  0x24   :  { %315 = dma.done.wait [#allocation6], 128  }
  0x25   :  { %316 = vsyncadd [#allocation6], 4294967168  ;;  %v374_v0 = vld [vmem:[#allocation2] sm:$0xff]  ;;  %v376_v1 = vld [vmem:[#allocation2 + $0x8] sm:$0xff]  ;;  %v321_v4 = vmov 3   ;;  %s322_s1 = smov 1  }
  0x26   :  { %v38_v2 = vmin.f32 %v374_v0, %v376_v1  ;;  %v41_v3 = vmax.f32 %v374_v0, %v376_v1  ;;  %236 = vset.pattern.permute.xlu0 %v321_v4  ;;  %v45_v6 = vld [vmem:[#allocation5] sm:$0xff]  ;;  %s323_s4 = smov 7   ;;  %v324_v14 = vmov 0   ;;  %s325_s5 = smov 120   ;;  %v328_v28 = vmov 7  }
  0x27   :  { %232 = vset.pattern.permute.xlu1 %v324_v14  ;;  %s326_s6 = smov 8   ;;  %s327_s7 = smov 121   ;;  %v329_v29 = vmov 1   ;;  %v330_v30 = vmov 2   ;;  %v331_v31 = vmov 4   ;;  %v332_v32 = vmov 5  }
  0x28   :  { %39 = vmin.xlane.f32.xlu0 %v38_v2  ;;  %v333_v37 = vmov 6   ;;  %s334_s8 = smov [#allocation7]  }
  0x29   :  { %s206_s9 = sshll.u32 %s334_s8, 4  ;;  %s207_s9 = int_to_ptr.vmem [resolvable:$true] %s206_s9 }
  0x2a   :  { %s291_s10 = scalar_lea.vmem %s207_s9, 256  ;;  %p296_p3 = scmp.lt.s32.totalorder %s207_s9, %s207_s9 }
  0x2b   :  { %p292_p2 = scmp.ne.s32.totalorder %s207_s9, %s291_s10  ;;  %p297_p4 = scmp.lt.s32.totalorder %s291_s10, %s291_s10 }
  0x2c   :  { %42 = vmax.xlane.f32.xlu0 %v41_v3 }
  0x2d   :  { %p298_p5 = por %p297_p4, %p296_p3 }
  0x2f   :  { %p299_p6 = pnand %p298_p5, %p292_p2 }
  0xb5   :  { %v40_v5 = vpop.xlane.xlu0 %39 }
  0xb9   :  { %v43_v7 = vpop.xlane.xlu0 %42 }
  0xba   :  { %v44_v8 = vsub.f32 %v43_v7, %v40_v5  ;;  %v70_v18 = vadd.f32 1e-06, %v43_v7 }
  0xbc   :  { %v46_v9 = vmul.f32 %v45_v6, %v44_v8 }
  0xbe   :  { %v383_v10 = vadd.f32 %v46_v9, %v40_v5 }
  0xc0   :  { %56 = vrot.lane.b32.xlu1 %v383_v10, %s322_s1  ;;  %v48_v11 = vsub.f32 %v383_v10, %v40_v5  ;;  %v71_v19 = vsub.f32 %v70_v18, %v383_v10 }
  0xc2   :  { %50 = vrot.lane.b32.xlu0 %v48_v11, %s323_s4 }
  0xc6   :  { %141 = vperm.xlu0 %236, %v383_v10  }
  0xca   :  { %239 = vset.pattern.permute.xlu0 %v324_v14 }
 0x132   :  { %v57_v12 = vpop.permute.xlu1 %56 }
 0x133   :  { %v59_v13 = vsub.f32 %v383_v10, %v57_v12 }
 0x134   :  { %v51_v17 = vpop.permute.xlu0 %50 }
 0x135   :  { %61 = vrot.lane.b32.xlu1 %v59_v13, %s323_s4  ;;  %v53_v20 = vmul.f32 %v51_v17, %v45_v6 }
 0x137   :  { %v54_v21 = vadd.f32 %v53_v20, %v40_v5 }
 0x145   :  { %v142_v44 = vpop.permute.xlu0 %141 }
 0x146   :  { %vm144_vm6 = vcmp.ge.f32.partialorder %v374_v0, %v142_v44  ;;  %vm145_vm7 = vcmp.ge.f32.partialorder %v376_v1, %v142_v44 }
 0x1a7   :  { %v62_v15 = vpop.permute.xlu1 %61 }
 0x1a8   :  { %v64_v16 = vmul.f32 %v62_v15, %v45_v6 }
 0x1aa   :  { %66 = vrot.lane.b32.xlu1 %v64_v16, %s325_s5 }
 0x1ae   :  { %73 = vrot.lane.b32.xlu1 %v71_v19, %s326_s6 }
 0x1b2   :  { %87 = vrot.lane.b32.xlu1 %v54_v21, %s327_s7 }
 0x21c   :  { %v67_v22 = vpop.permute.xlu1 %66 }
 0x21d   :  { %v69_v23 = vadd.f32 %v67_v22, %v383_v10 }
 0x21f   :  { %107 = vrot.lane.b32.xlu1 %v69_v23, %s322_s1 }
 0x220   :  { %v74_v24 = vpop.permute.xlu1 %73 }
 0x221   :  { %v76_v25 = vmul.f32 %v74_v24, %v45_v6 }
 0x223   :  { %78 = vrot.lane.b32.xlu1 %v76_v25, %s325_s5 }
 0x224   :  { %v88_v26 = vpop.permute.xlu1 %87 }
 0x225   :  { %v90_v27 = vsub.f32 %v69_v23, %v88_v26 }
 0x227   :  { %92 = vperm.xlu1 %232, %v383_v10   ;;  %99 = vperm.xlu0 %239, %v90_v27  }
 0x22b   :  { %233 = vset.pattern.permute.xlu1 %v328_v28  ;;  %240 = vset.pattern.permute.xlu0 %v329_v29 }
 0x22c   :  { %84 = vperm.xlu1 %233, %v54_v21  }
 0x230   :  { %234 = vset.pattern.permute.xlu1 %v329_v29 }
 0x231   :  { %112 = vperm.xlu1 %234, %v383_v10  }
 0x235   :  { %235 = vset.pattern.permute.xlu1 %v330_v30 }
 0x236   :  { %127 = vperm.xlu1 %235, %v383_v10  }
 0x23a   :  { %237 = vset.pattern.permute.xlu1 %v331_v31 }
 0x23b   :  { %155 = vperm.xlu1 %237, %v383_v10  }
 0x23f   :  { %238 = vset.pattern.permute.xlu1 %v332_v32 }
 0x240   :  { %169 = vperm.xlu1 %238, %v383_v10  }
 0x244   :  { %241 = vset.pattern.permute.xlu1 %v330_v30 }
 0x291   :  { %v108_v33 = vpop.permute.xlu1 %107 }
 0x292   :  { %v110_v34 = vsub.f32 %v69_v23, %v108_v33 }
 0x294   :  { %133 = vperm.xlu1 %241, %v110_v34   ;;  %119 = vperm.xlu0 %240, %v110_v34  }
 0x295   :  { %v79_v35 = vpop.permute.xlu1 %78 }
 0x296   :  { %v81_v36 = vadd.f32 %v79_v35, %v383_v10 }
 0x298   :  { %242 = vset.pattern.permute.xlu1 %v321_v4  ;;  %243 = vset.pattern.permute.xlu0 %v331_v31  ;;  %v182_v38 = vsub.f32 %v81_v36, %v108_v33 }
 0x299   :  { %147 = vperm.xlu1 %242, %v110_v34   ;;  %161 = vperm.xlu0 %243, %v110_v34  }
 0x29d   :  { %244 = vset.pattern.permute.xlu1 %v332_v32  ;;  %245 = vset.pattern.permute.xlu0 %v333_v37 }
 0x29e   :  { %175 = vperm.xlu1 %244, %v110_v34   ;;  %184 = vperm.xlu0 %245, %v383_v10  }
 0x2a2   :  { %246 = vset.pattern.permute.xlu1 %v333_v37 }
 0x2a3   :  { %191 = vperm.xlu1 %246, %v182_v38  }
 0x2a6   :  { %v93_v39 = vpop.permute.xlu1 %92  ;;  %v100_v45 = vpop.permute.xlu0 %99 }
 0x2a7   :  { %vm95_vm0 = vcmp.ge.f32.partialorder %v374_v0, %v93_v39  ;;  %vm96_vm1 = vcmp.ge.f32.partialorder %v376_v1, %v93_v39 }
 0x2a8   :  { %v102_v47 = vsel %vm95_vm0, %v100_v45, 0.0  ;;  %v103_v48 = vsel %vm96_vm1, %v100_v45, 0.0 }
 0x2ab   :  { %v85_v40 = vpop.permute.xlu1 %84 }
 0x2ac   :  { %v104_v49 = vadd.f32 %v102_v47, %v85_v40  ;;  %v105_v50 = vadd.f32 %v103_v48, %v85_v40 }
 0x2b0   :  { %v113_v41 = vpop.permute.xlu1 %112 }
 0x2b1   :  { %vm115_vm2 = vcmp.ge.f32.partialorder %v374_v0, %v113_v41  ;;  %vm116_vm3 = vcmp.ge.f32.partialorder %v376_v1, %v113_v41 }
 0x2b5   :  { %v128_v42 = vpop.permute.xlu1 %127 }
 0x2b6   :  { %vm130_vm4 = vcmp.ge.f32.partialorder %v374_v0, %v128_v42  ;;  %vm131_vm5 = vcmp.ge.f32.partialorder %v376_v1, %v128_v42 }
 0x2ba   :  { %v156_v43 = vpop.permute.xlu1 %155 }
 0x2bb   :  { %vm158_vm8 = vcmp.ge.f32.partialorder %v374_v0, %v156_v43  ;;  %vm159_vm9 = vcmp.ge.f32.partialorder %v376_v1, %v156_v43 }
 0x2bf   :  { %v170_v46 = vpop.permute.xlu1 %169 }
 0x2c0   :  { %vm172_vm10 = vcmp.ge.f32.partialorder %v374_v0, %v170_v46  ;;  %vm173_vm11 = vcmp.ge.f32.partialorder %v376_v1, %v170_v46 }
 0x313   :  { %v134_v51 = vpop.permute.xlu1 %133  ;;  %v120_v52 = vpop.permute.xlu0 %119 }
 0x314   :  { %v122_v53 = vsel %vm115_vm2, %v120_v52, 0.0  ;;  %v123_v54 = vsel %vm116_vm3, %v120_v52, 0.0  ;;  %v136_v57 = vsel %vm130_vm4, %v134_v51, 0.0  ;;  %v137_v58 = vsel %vm131_vm5, %v134_v51, 0.0 }
 0x315   :  { %v124_v55 = vadd.f32 %v122_v53, %v104_v49  ;;  %v125_v56 = vadd.f32 %v123_v54, %v105_v50 }
 0x317   :  { %v138_v59 = vadd.f32 %v136_v57, %v124_v55  ;;  %v139_v60 = vadd.f32 %v137_v58, %v125_v56 }
 0x318   :  { %v148_v61 = vpop.permute.xlu1 %147  ;;  %v162_v2 = vpop.permute.xlu0 %161 }
 0x319   :  { %v150_v62 = vsel %vm144_vm6, %v148_v61, 0.0  ;;  %v151_v63 = vsel %vm145_vm7, %v148_v61, 0.0  ;;  %v164_v5 = vsel %vm158_vm8, %v162_v2, 0.0  ;;  %v165_v6 = vsel %vm159_vm9, %v162_v2, 0.0 }
 0x31a   :  { %v152_v3 = vadd.f32 %v150_v62, %v138_v59  ;;  %v153_v4 = vadd.f32 %v151_v63, %v139_v60 }
 0x31c   :  { %v166_v8 = vadd.f32 %v164_v5, %v152_v3  ;;  %v167_v9 = vadd.f32 %v165_v6, %v153_v4 }
 0x31d   :  { %v176_v7 = vpop.permute.xlu1 %175  ;;  %v185_v12 = vpop.permute.xlu0 %184 }
 0x31e   :  { %v178_v10 = vsel %vm172_vm10, %v176_v7, 0.0  ;;  %v179_v11 = vsel %vm173_vm11, %v176_v7, 0.0  ;;  %vm187_vm12 = vcmp.ge.f32.partialorder %v374_v0, %v185_v12  ;;  %vm188_vm13 = vcmp.ge.f32.partialorder %v376_v1, %v185_v12 }
 0x31f   :  { %v180_v13 = vadd.f32 %v178_v10, %v166_v8  ;;  %v181_v14 = vadd.f32 %v179_v11, %v167_v9 }
 0x322   :  { %v192_v15 = vpop.permute.xlu1 %191 }
 0x323   :  { %v194_v16 = vsel %vm187_vm12, %v192_v15, 0.0  ;;  %v195_v17 = vsel %vm188_vm13, %v192_v15, 0.0 }
 0x324   :  { %v196_v18 = vadd.f32 %v194_v16, %v180_v13  ;;  %v197_v19 = vadd.f32 %v195_v17, %v181_v14 }
 0x326   :  { %198 = vst [vmem:[#allocation7] sm:$0xff] %v196_v18  ;;  %199 = vst [vmem:[#allocation7 + $0x8] sm:$0xff] %v197_v19 }
 0x327   :  { %302 = shalt.err (!%p299_p6)
}
 0x328   :  { %s303_s13 = scalar_lea.hbm %s427_s2, 256 }
 0x329   :  { %p304_p7 = scmp.ne.s32.totalorder %s427_s2, %s303_s13  ;;  %p307_p8 = scmp.lt.u32.totalorder %s303_s13, %s427_s2 }
 0x32b   :  { %p309_p9 = pnand %p307_p8, %p304_p7 }
 0x32d   :  { %312 = shalt.err (!%p309_p9)
}
 0x32e   :  { %209 = dma.vmem_to_hbm [thread:$0]  %s207_s9, 256, %s427_s2, [#allocation4]  }
 0x32f   :  { %317 = dma.done.wait [#allocation4], 256  }
 0x330   :  { %318 = vsyncadd [#allocation4], 4294967040 }
 0x331   :  { %213 = vsyncpa [#allocation3], 1 }
 0x332   :  { %214 = vsyncpa [#allocation6], 1 }
 0x333   :  { %215 = vsyncpa [#allocation4], 1 }

</bundles_post_ra>
